<compile_context>
chip_gen: v7x
topology: tpu7x:2x2x1
jax: 0.10.0
libtpu: 0.0.40
codegen_flags: <defaults>
</compile_context>

<pallas_src>
import functools
import math

import jax
import jax.numpy as jnp
from jax.experimental import pallas as pl
from jax.experimental.pallas import tpu as pltpu


_C1 = math.sqrt(2.0 / math.pi)      # sqrt(2/pi)
_C2 = 0.044715 * _C1                # 0.044715 * sqrt(2/pi)


def _round_up(x, m):
    return (x + m - 1) // m * m


def _gelu_tanh(h):
    """GELU, tanh approximation (matches the PyTorch module), constant-folded.

    0.5*h*(1 + tanh(sqrt(2/pi)*(h + 0.044715*h^3)))
      == h*(0.5 + 0.5*tanh(h*(C1 + C2*h*h)))
    """
    u = h * h
    return h * (0.5 + 0.5 * jnp.tanh(h * (_C1 + _C2 * u)))


# ---------------------------------------------------------------------------
# Kernels
# ---------------------------------------------------------------------------

def _ffn_kernel_resident(x_ref, w1_ref, b1_ref, w2_ref, b2_ref, o_ref, *,
                         gelu_dtype):
    """One row tile of the FFN with fully VMEM-resident weights.

    x_ref : (tm, Ep)   streamed token tile
    w1_ref: (Ep, Hp)   fc1 weight (resident)
    b1_ref: (1, Hp)    fc1 bias   (resident)
    w2_ref: (Hp, Ep)   fc2 weight (resident)
    b2_ref: (1, Ep)    fc2 bias   (resident)
    o_ref : (tm, Ep)   streamed output tile
    """
    h = jnp.dot(x_ref[...], w1_ref[...], preferred_element_type=jnp.float32)
    h = (h + b1_ref[...].astype(jnp.float32)).astype(gelu_dtype)
    g = _gelu_tanh(h)
    o = jnp.dot(g.astype(w2_ref.dtype), w2_ref[...],
                preferred_element_type=jnp.float32)
    o_ref[...] = (o + b2_ref[...].astype(jnp.float32)).astype(o_ref.dtype)


def _ffn_kernel_htiled(x_ref, w1_ref, b1_ref, w2_ref, b2_ref, o_ref, acc_ref,
                       *, gelu_dtype):
    """Row tile x hidden tile of the FFN with streamed weight blocks.

    Grid = (rows, hidden); fc2 partial products accumulate in f32 scratch.
    x_ref : (tm, Ep)   token tile (same block for all hidden steps)
    w1_ref: (Ep, tH)   fc1 weight block (streamed / double-buffered)
    b1_ref: (1, tH)    fc1 bias block
    w2_ref: (tH, Ep)   fc2 weight block (streamed / double-buffered)
    b2_ref: (1, Ep)    fc2 bias (tiny, revisited)
    o_ref : (tm, Ep)   output tile (written on the last hidden step)
    acc_ref: (tm, Ep)  f32 accumulator scratch
    """
    k = pl.program_id(1)

    @pl.when(k == 0)
    def _():
        acc_ref[...] = jnp.zeros_like(acc_ref)

    h = jnp.dot(x_ref[...], w1_ref[...], preferred_element_type=jnp.float32)
    h = (h + b1_ref[...].astype(jnp.float32)).astype(gelu_dtype)
    g = _gelu_tanh(h)
    acc_ref[...] += jnp.dot(g.astype(w2_ref.dtype), w2_ref[...],
                            preferred_element_type=jnp.float32)

    @pl.when(k == pl.num_programs(1) - 1)
    def _():
        o_ref[...] = (acc_ref[...]
                      + b2_ref[...].astype(jnp.float32)).astype(o_ref.dtype)


# ---------------------------------------------------------------------------
# Hardware queries & tile selection (all trace-time, static)
# ---------------------------------------------------------------------------

def _device_kind():
    try:
        return jax.devices()[0].device_kind.lower()
    except Exception:
        return ""


def _per_tc_vmem_bytes():
    kind = _device_kind()
    cap = None
    try:
        cap = int(pltpu.get_tpu_info().vmem_capacity_bytes)
    except Exception:
        cap = None
    if not cap or cap <= 0:
        cap = (64 if "v7" in kind else 128) * 1024 * 1024
    if "v7" in kind:                       # 2 TCs/chip: budget per TensorCore
        cap = min(cap, 64 * 1024 * 1024)
    return cap


def _gelu_dtype_for(weight_dtype):
    if jnp.dtype(weight_dtype) != jnp.dtype(jnp.bfloat16):
        return jnp.float32
    kind = _device_kind()
    # bf16 VPU/EUP exist on v6e/v7x; v5e would emulate bf16 elementwise ops.
    return jnp.bfloat16 if ("v6" in kind or "v7" in kind) else jnp.float32


def _pick_tm(M, row_cost_fn, budget):
    """Row tile: bound Mp-M waste, keep >=2 tiles for megacore, fit budget."""
    m_aligned = _round_up(max(M, 1), 8)
    best = None
    for tm in (512, 256, 128, 64, 32, 16, 8):
        if tm != 8 and tm > m_aligned:
            continue
        if tm != 8 and row_cost_fn(tm) > budget:
            continue
        Mp = _round_up(max(M, 1), tm)
        waste = (Mp - M) / Mp
        ntiles = Mp // tm
        key = (waste > 0.10, -min(ntiles, 2), -tm)
        if best is None or key < best[0]:
            best = (key, tm)
    return best[1]


# ---------------------------------------------------------------------------
# Wrappers
# ---------------------------------------------------------------------------

def prepare_ffn_params(w1, b1, w2, b2, compute_dtype=None):
    """Pad (and optionally cast) the weights to lane-dense shapes, ONCE.

    Do this outside the hot path: re-padding 100-MB-class weights on every
    call is a full HBM pass and dominates the small-M (decode) regime.
    Pass compute_dtype=jnp.bfloat16 to feed the MXU bf16 operands (~2-4x
    matmul rate, half the weight DMA bytes) when the model tolerates it.
    """
    E, H = w1.shape
    Ep, Hp = _round_up(E, 128), _round_up(H, 128)
    if compute_dtype is not None:
        w1, b1, w2, b2 = (a.astype(compute_dtype) for a in (w1, b1, w2, b2))
    if (Ep, Hp) != (E, H):
        w1 = jnp.pad(w1, ((0, Ep - E), (0, Hp - H)))
        b1 = jnp.pad(b1, (0, Hp - H))
        w2 = jnp.pad(w2, ((0, Hp - H), (0, Ep - E)))
        b2 = jnp.pad(b2, (0, Ep - E))
    return w1, b1.reshape(1, Hp), w2, b2.reshape(1, Ep)


@functools.partial(jax.jit, static_argnames=("force_htiled", "max_th"))
def feed_forward_prepared(x, w1p, b1p, w2p, b2p, *, force_htiled=False,
                          max_th=None):
    """x: (B, S, E) -> (B, S, E) with pre-padded params from prepare_ffn_params."""
    B, S, E = x.shape
    M = B * S
    Ep, Hp = w1p.shape

    vmem_cap = _per_tc_vmem_bytes()
    wsz = jnp.dtype(w1p.dtype).itemsize
    xsz = jnp.dtype(x.dtype).itemsize
    gelu_dtype = _gelu_dtype_for(w1p.dtype)

    weight_bytes = (2 * Ep * Hp + Hp + Ep) * wsz
    use_resident = (not force_htiled) and weight_bytes <= 0.45 * vmem_cap

    if use_resident:
        # per-row-tile VMEM: double-buffered x/out tiles + f32 h/g temporaries
        def row_cost(tm):
            return 2 * 2 * tm * Ep * xsz + 2 * tm * Hp * 4
        tm = _pick_tm(M, row_cost, 0.85 * vmem_cap - weight_bytes)
    else:
        def row_cost(tm):  # assume the smallest hidden block (tH=128)
            return 2 * 2 * tm * Ep * xsz + tm * Ep * 4 + 2 * tm * 128 * 4
        blk128 = 2 * (2 * Ep * 128 + 128) * wsz + Ep * wsz
        tm = _pick_tm(M, row_cost, 0.80 * vmem_cap - blk128)

    Mp = _round_up(max(M, 1), tm)

    x2d = x.reshape(M, E)
    if (Mp, Ep) != (M, E):
        x2d = jnp.pad(x2d, ((0, Mp - M), (0, Ep - E)))

    if use_resident:
        vmem_est = weight_bytes + 2 * 2 * tm * Ep * xsz + 2 * tm * Hp * 4
        vmem_limit = int(min(0.95 * vmem_cap,
                             max(1.5 * vmem_est, 32 * 1024 * 1024)))
        cost = pl.CostEstimate(
            flops=4 * Mp * Ep * Hp,
            transcendentals=Mp * Hp,
            bytes_accessed=2 * Mp * Ep * xsz + weight_bytes)
        resident = pl.BlockSpec(memory_space=pltpu.MemorySpace.VMEM)
        out2d = pl.pallas_call(
            functools.partial(_ffn_kernel_resident, gelu_dtype=gelu_dtype),
            out_shape=jax.ShapeDtypeStruct((Mp, Ep), x.dtype),
            grid_spec=pltpu.PrefetchScalarGridSpec(
                num_scalar_prefetch=0,
                grid=(Mp // tm,),
                in_specs=[
                    pl.BlockSpec((tm, Ep), lambda i: (i, 0)),   # x (streamed)
                    resident, resident, resident, resident,     # W1,b1,W2,b2
                ],
                out_specs=pl.BlockSpec((tm, Ep), lambda i: (i, 0)),
            ),
            compiler_params=pltpu.CompilerParams(
                dimension_semantics=("parallel",),
                vmem_limit_bytes=vmem_limit),
            cost_estimate=cost,
        )(x2d, w1p, b1p, w2p, b2p)
    else:
        # Largest hidden block (multiple of 128 that divides Hp) fitting VMEM.
        def htile_cost(tH):
            return (2 * (2 * Ep * tH + tH) * wsz + Ep * wsz
                    + 2 * 2 * tm * Ep * xsz + tm * Ep * 4 + 2 * tm * tH * 4)
        tH = 128
        for cand in (4096, 2048, 1024, 512, 256, 128):
            if max_th is not None and cand > max_th:
                continue
            if Hp % cand == 0 and htile_cost(cand) <= 0.80 * vmem_cap:
                tH = cand
                break
        vmem_est = htile_cost(tH)
        vmem_limit = int(min(0.95 * vmem_cap,
                             max(1.5 * vmem_est, 32 * 1024 * 1024)))
        cost = pl.CostEstimate(
            flops=4 * Mp * Ep * Hp,
            transcendentals=Mp * Hp,
            bytes_accessed=(2 * Mp * Ep * xsz
                            + (Mp // tm) * (2 * Ep * Hp + Hp) * wsz
                            + Ep * wsz))
        out2d = pl.pallas_call(
            functools.partial(_ffn_kernel_htiled, gelu_dtype=gelu_dtype),
            out_shape=jax.ShapeDtypeStruct((Mp, Ep), x.dtype),
            grid_spec=pltpu.PrefetchScalarGridSpec(
                num_scalar_prefetch=0,
                grid=(Mp // tm, Hp // tH),
                in_specs=[
                    pl.BlockSpec((tm, Ep), lambda i, k: (i, 0)),   # x
                    pl.BlockSpec((Ep, tH), lambda i, k: (0, k)),   # W1 block
                    pl.BlockSpec((1, tH), lambda i, k: (0, k)),    # b1 block
                    pl.BlockSpec((tH, Ep), lambda i, k: (k, 0)),   # W2 block
                    pl.BlockSpec((1, Ep), lambda i, k: (0, 0)),    # b2
                ],
                out_specs=pl.BlockSpec((tm, Ep), lambda i, k: (i, 0)),
                scratch_shapes=[pltpu.VMEM((tm, Ep), jnp.float32)],
            ),
            compiler_params=pltpu.CompilerParams(
                dimension_semantics=("parallel", "arbitrary"),
                vmem_limit_bytes=vmem_limit),
            cost_estimate=cost,
        )(x2d, w1p, b1p, w2p, b2p)

    if (Mp, Ep) != (M, E):
        out2d = out2d[:M, :E]
    return out2d.reshape(B, S, E)


def feed_forward(x, w1, b1, w2, b2):
    """One-shot convenience API (pads weights on every call; prefer
    prepare_ffn_params + feed_forward_prepared in a real model loop)."""
    return feed_forward_prepared(x, *prepare_ffn_params(w1, b1, w2, b2))


def _ref_feed_forward(x, w1, b1, w2, b2):
    h = jnp.einsum("bse,eh->bsh", x, w1) + b1
    c = jnp.sqrt(2.0 / jnp.pi)
    g = 0.5 * h * (1.0 + jnp.tanh(c * (h + 0.044715 * h ** 3)))
    return jnp.einsum("bsh,he->bse", g, w2) + b2


if __name__ == "__main__":
    key = jax.random.PRNGKey(0)

    def make_case(k, B, S, E):
        H = 4 * E
        kx, kw1, kb1, kw2, kb2 = jax.random.split(k, 5)
        x = jax.random.normal(kx, (B, S, E), dtype=jnp.float32)
        lim1 = 1.0 / jnp.sqrt(E)
        w1 = jax.random.uniform(kw1, (E, H), jnp.float32, -lim1, lim1)
        b1 = jax.random.uniform(kb1, (H,), jnp.float32, -lim1, lim1)
        lim2 = 1.0 / jnp.sqrt(H)
        w2 = jax.random.uniform(kw2, (H, E), jnp.float32, -lim2, lim2)
        b2 = jax.random.uniform(kb2, (E,), jnp.float32, -lim2, lim2)
        return x, w1, b1, w2, b2

    k1, k2 = jax.random.split(key)

    # Case 1: cfg['emb_dim'] = 32 -> hidden = 128; resident-weight path.
    x, w1, b1, w2, b2 = make_case(k1, B=2, S=8, E=32)
    out = feed_forward(x, w1, b1, w2, b2)
    jax.block_until_ready(out)
    ref = _ref_feed_forward(x, w1, b1, w2, b2)
    assert out.shape == x.shape
    assert jnp.allclose(out, ref, atol=1e-4, rtol=1e-4)

    # Case 2: odd row count + forced hidden-tiled accumulator path (the
    # fallback used for large E/H, decode, or v7x's 64 MiB/TC VMEM).
    x, w1, b1, w2, b2 = make_case(k2, B=2, S=13, E=64)
    params = prepare_ffn_params(w1, b1, w2, b2)
    out = feed_forward_prepared(x, *params, force_htiled=True, max_th=128)
    jax.block_until_ready(out)
    ref = _ref_feed_forward(x, w1, b1, w2, b2)
    assert out.shape == x.shape
    assert jnp.allclose(out, ref, atol=5e-4, rtol=5e-4)

    print("KERNEL_OK")
</pallas_src>

<mosaic_0001>
module attributes {stable_mosaic.version = 11 : i64} {
  func.func @_ffn_kernel_resident(%arg0: i32, %arg1: memref<8x128xf32, #tpu.memory_space<vmem>>, %arg2: memref<128x128xf32, #tpu.memory_space<vmem>>, %arg3: memref<1x128xf32, #tpu.memory_space<vmem>>, %arg4: memref<128x128xf32, #tpu.memory_space<vmem>>, %arg5: memref<1x128xf32, #tpu.memory_space<vmem>>, %arg6: memref<8x128xf32, #tpu.memory_space<vmem>>) attributes {dimension_semantics = [#tpu.dimension_semantics<parallel>], iteration_bounds = array<i64: 2>, scalar_prefetch = 0 : i64, scratch_operands = 0 : i64, tpu.core_type = #tpu.core_type<tc>, window_params = [{transform_indices = @transform_0, window_bounds = array<i64: 8, 128>}, {pipeline_mode = #tpu.pipeline_mode<synchronous>, transform_indices = @transform_1, window_bounds = array<i64: 128, 128>}, {pipeline_mode = #tpu.pipeline_mode<synchronous>, transform_indices = @transform_2, window_bounds = array<i64: 1, 128>}, {pipeline_mode = #tpu.pipeline_mode<synchronous>, transform_indices = @transform_3, window_bounds = array<i64: 128, 128>}, {pipeline_mode = #tpu.pipeline_mode<synchronous>, transform_indices = @transform_4, window_bounds = array<i64: 1, 128>}, {transform_indices = @transform_5, window_bounds = array<i64: 8, 128>}]} {
    %c0 = arith.constant 0 : index
    %c0_0 = arith.constant 0 : index
    %0 = vector.load %arg1[%c0, %c0_0] : memref<8x128xf32, #tpu.memory_space<vmem>>, vector<8x128xf32>
    %c0_1 = arith.constant 0 : index
    %c0_2 = arith.constant 0 : index
    %1 = vector.load %arg2[%c0_1, %c0_2] : memref<128x128xf32, #tpu.memory_space<vmem>>, vector<128x128xf32>
    %cst = arith.constant dense<0.000000e+00> : vector<8x128xf32>
    %2 = tpu.matmul %0, %1, %cst {dimension_numbers = #tpu.dot_dimension_numbers<[1], [0], [0], [1], [0, 0, 1, 1], [], []>} : vector<8x128xf32>, vector<128x128xf32>, vector<8x128xf32> -> vector<8x128xf32>
    %c0_3 = arith.constant 0 : index
    %c0_4 = arith.constant 0 : index
    %3 = vector.load %arg3[%c0_3, %c0_4] : memref<1x128xf32, #tpu.memory_space<vmem>>, vector<1x128xf32>
    %4 = vector.broadcast %3 : vector<1x128xf32> to vector<8x128xf32>
    %5 = arith.addf %2, %4 : vector<8x128xf32>
    %6 = arith.mulf %5, %5 : vector<8x128xf32>
    %cst_5 = arith.constant 0.0356774069 : f32
    %7 = vector.broadcast %cst_5 : f32 to vector<8x128xf32>
    %8 = arith.mulf %7, %6 : vector<8x128xf32>
    %cst_6 = arith.constant 0.797884583 : f32
    %9 = vector.broadcast %cst_6 : f32 to vector<8x128xf32>
    %10 = arith.addf %9, %8 : vector<8x128xf32>
    %11 = arith.mulf %5, %10 : vector<8x128xf32>
    %12 = math.tanh %11 : vector<8x128xf32>
    %cst_7 = arith.constant 5.000000e-01 : f32
    %13 = vector.broadcast %cst_7 : f32 to vector<8x128xf32>
    %14 = arith.mulf %13, %12 : vector<8x128xf32>
    %cst_8 = arith.constant 5.000000e-01 : f32
    %15 = vector.broadcast %cst_8 : f32 to vector<8x128xf32>
    %16 = arith.addf %15, %14 : vector<8x128xf32>
    %17 = arith.mulf %5, %16 : vector<8x128xf32>
    %c0_9 = arith.constant 0 : index
    %c0_10 = arith.constant 0 : index
    %18 = vector.load %arg4[%c0_9, %c0_10] : memref<128x128xf32, #tpu.memory_space<vmem>>, vector<128x128xf32>
    %cst_11 = arith.constant dense<0.000000e+00> : vector<8x128xf32>
    %19 = tpu.matmul %17, %18, %cst_11 {dimension_numbers = #tpu.dot_dimension_numbers<[1], [0], [0], [1], [0, 0, 1, 1], [], []>} : vector<8x128xf32>, vector<128x128xf32>, vector<8x128xf32> -> vector<8x128xf32>
    %c0_12 = arith.constant 0 : index
    %c0_13 = arith.constant 0 : index
    %20 = vector.load %arg5[%c0_12, %c0_13] : memref<1x128xf32, #tpu.memory_space<vmem>>, vector<1x128xf32>
    %21 = vector.broadcast %20 : vector<1x128xf32> to vector<8x128xf32>
    %22 = arith.addf %19, %21 : vector<8x128xf32>
    %c0_14 = arith.constant 0 : index
    %c0_15 = arith.constant 0 : index
    %23 = vector.load %arg6[%c0_14, %c0_15] : memref<8x128xf32, #tpu.memory_space<vmem>>, vector<8x128xf32>
    tpu.vector_store %arg6[%c0_14, %c0_15], %22 {strides = array<i32>} : memref<8x128xf32, #tpu.memory_space<vmem>>, vector<8x128xf32>,
    return
  }
  func.func @transform_0(%arg0: i32) -> (i32, i32) {
    %c0_i32 = arith.constant 0 : i32
    %c0_i32_0 = arith.constant 0 : i32
    return %arg0, %c0_i32 : i32, i32
  }
  func.func @transform_1(%arg0: i32) -> (i32, i32) {
    %c0_i32 = arith.constant 0 : i32
    %c0_i32_0 = arith.constant 0 : i32
    %c0_i32_1 = arith.constant 0 : i32
    return %c0_i32, %c0_i32_0 : i32, i32
  }
  func.func @transform_2(%arg0: i32) -> (i32, i32) {
    %c0_i32 = arith.constant 0 : i32
    %c0_i32_0 = arith.constant 0 : i32
    %c0_i32_1 = arith.constant 0 : i32
    return %c0_i32, %c0_i32_0 : i32, i32
  }
  func.func @transform_3(%arg0: i32) -> (i32, i32) {
    %c0_i32 = arith.constant 0 : i32
    %c0_i32_0 = arith.constant 0 : i32
    %c0_i32_1 = arith.constant 0 : i32
    return %c0_i32, %c0_i32_0 : i32, i32
  }
  func.func @transform_4(%arg0: i32) -> (i32, i32) {
    %c0_i32 = arith.constant 0 : i32
    %c0_i32_0 = arith.constant 0 : i32
    %c0_i32_1 = arith.constant 0 : i32
    return %c0_i32, %c0_i32_0 : i32, i32
  }
  func.func @transform_5(%arg0: i32) -> (i32, i32) {
    %c0_i32 = arith.constant 0 : i32
    %c0_i32_0 = arith.constant 0 : i32
    return %arg0, %c0_i32 : i32, i32
  }
}

</mosaic_0001>

<bundles_post_ra>
// kernel: feed_forward_prepared.1
= control target key start
LH: loop header
LB: loop body
LE: loop exit
PB: predicated region body
PF: predicated region fallthrough
CT: control target
= control target key end

     0   :  { %10 = vsyncpa [#allocation3], 0  ;;  %s955_s0 = inlined_call_operand.vmem [shape: f32[16,128], index: 0, kind: input, shape index: {}]   ;;  %s956_s1 = inlined_call_operand.hbm [shape: f32[128,128], index: 1, kind: input, shape index: {}]   ;;  %s957_s2 = inlined_call_operand.vmem [shape: f32[1,128], index: 2, kind: input, shape index: {}]   ;;  %s958_s3 = inlined_call_operand.hbm [shape: f32[128,128], index: 3, kind: input, shape index: {}]   ;;  %s959_s4 = inlined_call_operand.vmem [shape: f32[1,128], index: 4, kind: input, shape index: {}]   ;;  %s960_s5 = inlined_call_operand.vmem [shape: f32[16,128], index: 5, kind: output, shape index: {}]  }
   0x1   :  { %11 = vsyncpa [#allocation5], 0  ;;  %s833_s18 = smov 0  }
   0x2 LB: > { %s839_s19 = sadd.s32 4294967295, %s794_s18   ;;  %p523_p0 = scmp.ge.s32.totalorder %s794_s18, 1  ;;  %s794_s18 = sphi %s833_s18, %s17_s18  }
   0x3   : > { %p158_p1 = scmp.lt.s32.totalorder %s794_s18, 3  ;;  %s796_s20 = smov [#allocation2]  }
   0x4   : > { %s170_s21 = sshll.u32 %s796_s20, 4  ;;  %p961_p3 = scmp.eq.s32.totalorder %s839_s19, 0  ;;  %s171_s21 = int_to_ptr.vmem [resolvable:$true] %s170_s21 }
   0x5   : > { %p843_p2 = pnand %p523_p0, %p158_p1  ;;  %s797_s23 = smov [#allocation4]  }
   0x6   : > { %s186_s24 = sshll.u32 %s797_s23, 4  ;;  %s724_s28 = scalar_lea.hbm %s956_s1, 2048  ;;  %s856_s24 = int_to_ptr.vmem [resolvable:$true] %s186_s24 }
   0x7   : > { %s963_s22 = scalar_select %p843_p2, 1, 0 }
   0x8   : > { %p696_p4 = pneg %p843_p2  ;;  %p725_p6 = scmp.ne.s32.totalorder %s956_s1, %s724_s28 }
   0x9   : > { %p731_p10 = scmp.lt.u32.totalorder %s724_s28, %s956_s1 }
   0xa   : > { %p852_p5 = pnand %p961_p3, %p696_p4 }
   0xc   : > { %p726_p7 = pneg %p852_p5 }
   0xe   : > { %p727_p8 = pnand %p726_p7, %p725_p6 }
  0x10   : > { %p728_p9 = pneg %p727_p8 }
  0x12   : > { %p733_p11 = pnand %p731_p10, %p728_p9 }
  0x14   : > { %736 = shalt.err (!%p733_p11)
}
  0x15   : > { %s737_s8 = scalar_lea.vmem %s171_s21, 2048  ;;  %p745_p1 = scmp.lt.s32.totalorder %s171_s21, %s171_s21 }
  0x16   : > { %p738_p12 = scmp.ne.s32.totalorder %s171_s21, %s737_s8  ;;  %p746_p4 = scmp.lt.s32.totalorder %s737_s8, %s737_s8 }
  0x18   : > { %p740_p13 = pnand %p738_p12, %p726_p7  ;;  %p747_p3 = por %p746_p4, %p745_p1 }
  0x1a   : > { %p741_p0 = pneg %p740_p13 }
  0x1c   : > { %p748_p2 = pnand %p747_p3, %p741_p0 }
  0x1e   : > { %751 = shalt.err (!%p748_p2)
}
  0x1f   : > { %s798_s9 = smov 128   ;;  %s799_s10 = smov 8  }
  0x20   : > { %699 = dma.hbm_to_vmem [thread:$0]  (!%p852_p5), %s956_s1, 2048, %s171_s21, [#allocation3], %s798_s9, %s798_s9, %s799_s10  }
  0x21   : > { %s752_s15 = scalar_lea.hbm %s958_s3, 2048 }
  0x22   : > { %p753_p6 = scmp.ne.s32.totalorder %s958_s3, %s752_s15  ;;  %p759_p8 = scmp.lt.u32.totalorder %s752_s15, %s958_s3 }
  0x24   : > { %p755_p2 = pnand %p753_p6, %p726_p7 }
  0x26   : > { %p756_p3 = pneg %p755_p2 }
  0x28   : > { %p761_p9 = pnand %p759_p8, %p756_p3 }
  0x2a   : > { %764 = shalt.err (!%p761_p9)
}
  0x2b   : > { %s765_s21 = scalar_lea.vmem %s856_s24, 2048  ;;  %p773_p13 = scmp.lt.s32.totalorder %s856_s24, %s856_s24 }
  0x2c   : > { %p766_p10 = scmp.ne.s32.totalorder %s856_s24, %s765_s21  ;;  %p774_p0 = scmp.lt.s32.totalorder %s765_s21, %s765_s21 }
  0x2e   : > { %p768_p11 = pnand %p766_p10, %p726_p7  ;;  %p775_p1 = por %p774_p0, %p773_p13 }
  0x30   : > { %p769_p12 = pneg %p768_p11 }
  0x32   : > { %p776_p4 = pnand %p775_p1, %p769_p12 }
  0x34   : > { %779 = shalt.err (!%p776_p4)
}
  0x35   : > { %702 = dma.hbm_to_vmem [thread:$0]  (!%p852_p5), %s958_s3, 2048, %s856_s24, [#allocation5], %s798_s9, %s798_s9, %s799_s10  }
  0x36   : > { %p965_p6 = scmp.ne.s32.totalorder %s963_s22, 0 }
  0x37   : > { %p966_p2 = scmp.eq.s32.totalorder (!%p965_p6), %s839_s19, 0 }
  0x38   : > { %212 = sbr.rel (%p965_p6) target bundleno = 555 (0x22b), region = 40 }
  0x3f   : > { %785 = dma.done.wait (%p966_p2), [#allocation3], 2048   ;;  %p967_p7 = pmov %p966_p2 }
  0x40   : > { %p968_p3 = pmov %p966_p2 }
  0x41   : > { %787 = vsyncadd (%p967_p7), [#allocation3], 4294965248 }
  0x42   : > { %789 = dma.done.wait (%p968_p3), [#allocation5], 2048   ;;  %p969_p8 = pmov %p966_p2 }
  0x43   : > { %v800_v0 = vmov 0.0|0.0   ;;  %vm801_vm0 = vmmov 0   ;;  %v802_v1 = vmov 0.0   ;;  %v251_v2 = vld [vmem:[#allocation2] sm:$0xff]  ;;  %v252_v3 = vld [vmem:[#allocation2 + $0x8] sm:$0xff]  ;;  %v253_v4 = vld [vmem:[#allocation2 + $0x10] sm:$0xff] }
  0x44   : > { %791 = vsyncadd (%p969_p8), [#allocation5], 4294965248  ;;  %640 = vmatprep.subr.bf16.mxu0 %v800_v0  ;;  %602 = vmatprep.mubr.msk.f32.mxu0 %vm801_vm0, %v802_v1  ;;  %v641_v5 = vpack.c.bf16 %v252_v3, %v251_v2  ;;  %v254_v6 = vld [vmem:[#allocation2 + $0x18] sm:$0xff]  ;;  %v255_v8 = vld [vmem:[#allocation2 + $0x20] sm:$0xff]  ;;  %p242_p5 = scmp.lt.s32.totalorder %s839_s19, 1 }
  0x45   : > { %664 = vmatprep.subr.bf16.mxu1 %v800_v0  ;;  %637 = vmatprep.mubr.msk.f32.mxu1 %vm801_vm0, %v802_v1  ;;  %v644_v7 = vpack.c.bf16 %v254_v6, %v253_v4  ;;  %v256_v9 = vld [vmem:[#allocation2 + $0x28] sm:$0xff]  ;;  %v352_v10 = vld [vmem:[#allocation4] sm:$0xff]  ;;  %v257_v14 = vld [vmem:[#allocation2 + $0x30] sm:$0xff] }
  0x46   : > { %642 = vmatpush3.bf16.msra.mxu0 %v641_v5  ;;  %v353_v11 = vld [vmem:[#allocation4 + $0x8] sm:$0xff]  ;;  %v647_v12 = vpack.c.bf16 %v256_v9, %v255_v8  ;;  %v258_v15 = vld [vmem:[#allocation2 + $0x38] sm:$0xff]  ;;  %v259_v17 = vld [vmem:[#allocation2 + $0x40] sm:$0xff]  ;;  %s971_s19 = smov (!%p242_p5, %s839_s19), 1 }
  0x47   : > { %643 = vmatprep.subr.bf16.mxu0 %v800_v0  ;;  %v665_v13 = vpack.c.bf16 %v353_v11, %v352_v10  ;;  %v650_v16 = vpack.c.bf16 %v258_v15, %v257_v14  ;;  %v260_v18 = vld [vmem:[#allocation2 + $0x48] sm:$0xff]  ;;  %v261_v20 = vld [vmem:[#allocation2 + $0x50] sm:$0xff]  ;;  %v262_v21 = vld [vmem:[#allocation2 + $0x58] sm:$0xff]  ;;  %s530_s22 = sshll.u32 %s971_s19, 3 }
  0x48   : > { %v653_v19 = vpack.c.bf16 %v260_v18, %v259_v17  ;;  %v656_v22 = vpack.c.bf16 %v262_v21, %v261_v20  ;;  %v263_v23 = vld [vmem:[#allocation2 + $0x60] sm:$0xff]  ;;  %v264_v24 = vld [vmem:[#allocation2 + $0x68] sm:$0xff]  ;;  %v265_v26 = vld [vmem:[#allocation2 + $0x70] sm:$0xff]  ;;  %s245_s28 = scalar_lea.vmem %s955_s0, %s530_s22  ;;  %s249_s10 = scalar_lea.vmem %s960_s5, %s530_s22 }
  0x49   : > { %666 = vmatpush3.bf16.msra.mxu1 %v665_v13  ;;  %v659_v25 = vpack.c.bf16 %v264_v24, %v263_v23  ;;  %v266_v27 = vld [vmem:[#allocation2 + $0x78] sm:$0xff]  ;;  %v250_v29 = vld [vmem:[%s245_s28] sm:$0xff]  ;;  %v354_v30 = vld [vmem:[#allocation4 + $0x10] sm:$0xff] }
  0x4a   : > { %645 = vmatpush3.bf16.msra.mxu0 %v644_v7  ;;  %667 = vmatprep.subr.bf16.mxu1 %v800_v0  ;;  %v662_v28 = vpack.c.bf16 %v266_v27, %v265_v26  ;;  %v355_v31 = vld [vmem:[#allocation4 + $0x18] sm:$0xff]  ;;  %v356_v33 = vld [vmem:[#allocation4 + $0x20] sm:$0xff]  ;;  %v357_v34 = vld [vmem:[#allocation4 + $0x28] sm:$0xff] }
  0x4b   : > { %646 = vmatprep.subr.bf16.mxu0 %v800_v0  ;;  %v668_v32 = vpack.c.bf16 %v355_v31, %v354_v30  ;;  %v671_v35 = vpack.c.bf16 %v357_v34, %v356_v33  ;;  %v358_v36 = vld [vmem:[#allocation4 + $0x30] sm:$0xff]  ;;  %v359_v37 = vld [vmem:[#allocation4 + $0x38] sm:$0xff]  ;;  %v360_v39 = vld [vmem:[#allocation4 + $0x40] sm:$0xff] }
  0x4c   : > { %v674_v38 = vpack.c.bf16 %v359_v37, %v358_v36  ;;  %v361_v40 = vld [vmem:[#allocation4 + $0x48] sm:$0xff]  ;;  %v362_v42 = vld [vmem:[#allocation4 + $0x50] sm:$0xff]  ;;  %v363_v43 = vld [vmem:[#allocation4 + $0x58] sm:$0xff] }
  0x4d   : > { %669 = vmatpush3.bf16.msra.mxu1 %v668_v32  ;;  %v677_v41 = vpack.c.bf16 %v361_v40, %v360_v39  ;;  %v680_v44 = vpack.c.bf16 %v363_v43, %v362_v42  ;;  %v364_v45 = vld [vmem:[#allocation4 + $0x60] sm:$0xff]  ;;  %v365_v46 = vld [vmem:[#allocation4 + $0x68] sm:$0xff]  ;;  %v366_v48 = vld [vmem:[#allocation4 + $0x70] sm:$0xff] }
  0x4e   : > { %648 = vmatpush3.bf16.msra.mxu0 %v647_v12  ;;  %670 = vmatprep.subr.bf16.mxu1 %v800_v0  ;;  %v683_v47 = vpack.c.bf16 %v365_v46, %v364_v45  ;;  %v367_v49 = vld [vmem:[#allocation4 + $0x78] sm:$0xff]  ;;  %v532_v51 = vld [vmem:[%s957_s2] ss:$0 sm:$0xff] }
  0x4f   : > { %649 = vmatprep.subr.bf16.mxu0 %v800_v0  ;;  %v686_v50 = vpack.c.bf16 %v367_v49, %v366_v48  ;;  %v533_v63 = vld [vmem:[%s959_s4] ss:$0 sm:$0xff] }
  0x51   : > { %672 = vmatpush3.bf16.msra.mxu1 %v671_v35 }
  0x52   : > { %651 = vmatpush3.bf16.msra.mxu0 %v650_v16  ;;  %673 = vmatprep.subr.bf16.mxu1 %v800_v0 }
  0x53   : > { %652 = vmatprep.subr.bf16.mxu0 %v800_v0 }
  0x55   : > { %675 = vmatpush3.bf16.msra.mxu1 %v674_v38 }
  0x56   : > { %654 = vmatpush3.bf16.msra.mxu0 %v653_v19  ;;  %676 = vmatprep.subr.bf16.mxu1 %v800_v0 }
  0x57   : > { %655 = vmatprep.subr.bf16.mxu0 %v800_v0 }
  0x59   : > { %678 = vmatpush3.bf16.msra.mxu1 %v677_v41 }
  0x5a   : > { %657 = vmatpush3.bf16.msra.mxu0 %v656_v22  ;;  %679 = vmatprep.subr.bf16.mxu1 %v800_v0 }
  0x5b   : > { %658 = vmatprep.subr.bf16.mxu0 %v800_v0 }
  0x5d   : > { %681 = vmatpush3.bf16.msra.mxu1 %v680_v44 }
  0x5e   : > { %660 = vmatpush3.bf16.msra.mxu0 %v659_v25  ;;  %682 = vmatprep.subr.bf16.mxu1 %v800_v0 }
  0x5f   : > { %661 = vmatprep.subr.bf16.mxu0 %v800_v0 }
  0x61   : > { %684 = vmatpush3.bf16.msra.mxu1 %v683_v47 }
  0x62   : > { %663 = vmatpush3.bf16.msra.mxu0 %v662_v28  ;;  %685 = vmatprep.subr.bf16.mxu1 %v800_v0 }
  0x65   : > { %603 = vmatmul.mubr.f32.vlgmr.msra.gmra.mrb[0].mxu0 %v250_v29  ;;  %687 = vmatpush3.bf16.msra.mxu1 %v686_v50 }
 0x138   : > { %v340_v52 = vpop.f32.mrb[0].mxu0 }
 0x139   : > { %v341_v53 = vadd.f32 %v532_v51, %v340_v52  ;;  %v604_v54 = vpop.f32.mrb[1].mxu0 }
 0x13b   : > { %v344_v55 = vmul.f32 %v341_v53, %v341_v53 }
 0x13d   : > { %v345_v56 = vmul.f32 0.035677407, %v344_v55 }
 0x13f   : > { %v346_v57 = vadd.f32 0.7978846, %v345_v56 }
 0x141   : > { %v347_v58 = vmul.f32 %v346_v57, %v341_v53 }
 0x143   : > { %722 = vtanh.f32 %v347_v58 }
 0x14d   : > { %v723_v59 = vpop.eup %722 }
 0x14e   : > { %v349_v60 = vmul.f32 0.5, %v723_v59 }
 0x150   : > { %v350_v61 = vadd.f32 0.5, %v349_v60 }
 0x152   : > { %v351_v62 = vmul.f32 %v350_v61, %v341_v53 }
 0x154   : > { %638 = vmatmul.mubr.f32.vlgmr.msra.gmra.mrb[0].mxu1 %v351_v62 }
 0x227   : > { %v441_v0 = vpop.f32.mrb[0].mxu1 }
 0x228   : > { %v442_v1 = vadd.f32 %v533_v63, %v441_v0  ;;  %v639_v2 = vpop.f32.mrb[1].mxu1 }
 0x22a   : > { %445 = vst [vmem:[%s249_s10] sm:$0xff] %v442_v1 }
 0x22b PF: > { %s17_s18 = sadd.s32 1, %s794_s18  }
 0x22c   : > { %p14_p9 = scmp.ge.s32.totalorder %s17_s18, 4  }
 0x22e   :  { %16 = sbr.rel (!%p14_p9) target bundleno = 2 (0x2), region = 79 }
 0x235   :  { %465 = vsyncpa [#allocation3], 1 }
 0x236   :  { %467 = vsyncpa [#allocation3 + $0x1], 1 }
 0x237   :  { %468 = vsyncpa [#allocation5], 1 }

</bundles_post_ra>
